<compile_context>
chip_gen: v6e
topology: v6e:2x2x1
jax: 0.10.0
libtpu: 0.0.40
codegen_flags: <defaults>
</compile_context>

<pallas_src>
import math
from functools import partial

import jax
import jax.numpy as jnp
from jax.experimental import pallas as pl
from jax.experimental.pallas import tpu as pltpu

EPS = 1e-10


def _choose_row_tile(n_rows, lane, d, max_rows):
    """Largest row tile that divides n_rows, is a multiple of 8, keeps the gamma/beta
    pattern identical for every tile (d | tile*lane) and respects the VMEM budget."""
    if n_rows <= max_rows:
        return n_rows
    unit = math.lcm(8, d // math.gcd(d, lane))
    best = 0
    t = unit
    limit = min(n_rows, max_rows)
    while t <= limit:
        if n_rows % t == 0:
            best = t
        t += unit
    # TODO(synk): if no evenly-dividing tile exists we fall back to the whole plane,
    # which can exceed VMEM for pathological row counts; a masked partial-tile path
    # would remove that limitation.
    return best if best > 0 else n_rows


def _make_kernel(inv_n, eps):
    def kernel(x_ref, g_ref, b_ref, o_ref, acc_ref):
        # x_ref/o_ref blocks: (1, 2, t_rows, lane); g_ref/b_ref: (t_rows, lane)
        # acc_ref scratch:    (2, lane) per-lane running sums (row 0 real, row 1 imag)
        ph = pl.program_id(1)
        r = pl.program_id(2)

        @pl.when((ph == 0) & (r == 0))
        def _init():
            acc_ref[...] = jnp.zeros_like(acc_ref)

        @pl.when(ph == 0)
        def _accumulate():
            acc_ref[0:1, :] += jnp.sum(x_ref[0, 0], axis=0, keepdims=True)
            acc_ref[1:2, :] += jnp.sum(x_ref[0, 1], axis=0, keepdims=True)

        @pl.when(ph == 1)
        def _normalize():
            acc = acc_ref[...]
            mr = jnp.sum(acc[0:1, :]) * inv_n          # mean of real part (scalar)
            mi = jnp.sum(acc[1:2, :]) * inv_n          # mean of imag part (scalar)
            xr = x_ref[0, 0]                           # (t_rows, lane)
            xi = x_ref[0, 1]
            cr = xr - mr
            ci = xi - mi
            # std = sqrt(|x - mean|^2 + eps), elementwise (matches the torch code).
            inv_std = jax.lax.rsqrt(cr * cr + ci * ci + eps)
            g = g_ref[...]
            o_ref[0, 0] = g * (cr * inv_std) + b_ref[...]   # beta -> real part only
            o_ref[0, 1] = g * (ci * inv_std)

    return kernel


@partial(jax.jit, static_argnames=("eps", "max_tile_rows"))
def complex_layer_norm(x, gamma, beta, *, eps=EPS, max_tile_rows=2048):
    """x: complex64 (B, S, D); gamma, beta: float32 (D,). Returns complex64 (B, S, D)."""
    B, S, D = x.shape
    n_plane = S * D
    lane = 128 if n_plane % 128 == 0 else D      # lane-dense layout when possible
    n_rows = n_plane // lane
    t_rows = _choose_row_tile(n_rows, lane, D, max_tile_rows)
    n_rt = n_rows // t_rows
    inv_n = 1.0 / float(n_plane)

    # complex -> planar float32, one fused XLA pass under jit.
    xr = jnp.real(x).astype(jnp.float32)
    xi = jnp.imag(x).astype(jnp.float32)
    xs = jnp.stack((xr, xi), axis=1).reshape(B, 2, n_rows, lane)

    # gamma/beta expanded to one tile-periodic plane (tile stride is a multiple of D,
    # so the same plane is correct for every row tile).
    pos = jnp.arange(t_rows * lane, dtype=jnp.int32) % D
    g_plane = gamma.astype(jnp.float32)[pos].reshape(t_rows, lane)
    b_plane = beta.astype(jnp.float32)[pos].reshape(t_rows, lane)

    x_spec = pl.BlockSpec((1, 2, t_rows, lane), lambda b, ph, r: (b, 0, r, 0))
    # Phase 0: park on row-tile 0 (never written, never flushed); phase 1: follow r.
    o_spec = pl.BlockSpec((1, 2, t_rows, lane), lambda b, ph, r: (b, 0, ph * r, 0))
    p_spec = pl.BlockSpec((t_rows, lane), lambda b, ph, r: (0, 0))

    blk_bytes = 2 * t_rows * lane * 4
    pln_bytes = t_rows * lane * 4
    est = 4 * blk_bytes + 4 * pln_bytes + 4 * lane * 4 + (1 << 20)
    vmem_limit = int(min(100 * (1 << 20), max(32 * (1 << 20), 2 * est)))

    cost = pl.CostEstimate(
        flops=12 * B * n_plane,
        transcendentals=B * n_plane,
        bytes_accessed=3 * B * 2 * n_plane * 4,   # <=2 reads + 1 write of the f32 slab
    )

    out = pl.pallas_call(
        _make_kernel(inv_n, float(eps)),
        out_shape=jax.ShapeDtypeStruct((B, 2, n_rows, lane), jnp.float32),
        grid_spec=pltpu.PrefetchScalarGridSpec(
            num_scalar_prefetch=0,
            grid=(B, 2, n_rt),
            in_specs=[x_spec, p_spec, p_spec],
            out_specs=o_spec,
            scratch_shapes=[pltpu.VMEM((2, lane), jnp.float32)],
        ),
        compiler_params=pltpu.CompilerParams(
            dimension_semantics=("parallel", "arbitrary", "arbitrary"),
            vmem_limit_bytes=vmem_limit,
        ),
        cost_estimate=cost,
        input_output_aliases={0: 0},   # x (f32 view) is dead after the kernel
    )(xs, g_plane, b_plane)

    # planar float32 -> complex, one fused XLA pass under jit.
    o = out.reshape(B, 2, S, D)
    return jax.lax.complex(o[:, 0], o[:, 1])


def _reference(x, gamma, beta, eps=EPS):
    # Pure-JAX reference mirroring the torch forward.
    dims = tuple(range(1, x.ndim))
    mean = jnp.mean(x.real, axis=dims, keepdims=True) + 1j * jnp.mean(
        x.imag, axis=dims, keepdims=True)
    xm = x - mean
    std = jnp.sqrt(jnp.abs(xm * jnp.conj(xm)) + eps)
    y = (xm.real / std) + 1j * (xm.imag / std)
    return gamma * y + beta


if __name__ == "__main__":
    root = jax.random.PRNGKey(0)

    def make_input(key, shape):
        kr, ki = jax.random.split(key)
        return (jax.random.normal(kr, shape, dtype=jnp.float32)
                + 1j * jax.random.normal(ki, shape, dtype=jnp.float32)
                ).astype(jnp.complex64)

    k1, k2, k3, k4 = jax.random.split(root, 4)

    # Test 1: module-default affine params (gamma=1, beta=0), small shape.
    B, S, D = 2, 8, 32
    x = make_input(k1, (B, S, D))
    gamma = jnp.ones((D,), jnp.float32)
    beta = jnp.zeros((D,), jnp.float32)
    y = jax.block_until_ready(complex_layer_norm(x, gamma, beta))
    y_ref = _reference(x, gamma, beta)
    assert jnp.allclose(y.real, y_ref.real, atol=1e-5, rtol=3e-5)
    assert jnp.allclose(y.imag, y_ref.imag, atol=1e-5, rtol=3e-5)

    # Test 2: exercises the multi-tile two-phase reduction path (4 row tiles per
    # batch) and non-trivial gamma/beta.
    B2, S2, D2 = 2, 64, 128
    x2 = make_input(k2, (B2, S2, D2))
    g2 = jax.random.normal(k3, (D2,), jnp.float32)
    b2 = jax.random.normal(k4, (D2,), jnp.float32)
    y2 = jax.block_until_ready(complex_layer_norm(x2, g2, b2, max_tile_rows=16))
    y2_ref = _reference(x2, g2, b2)
    assert jnp.allclose(y2.real, y2_ref.real, atol=1e-5, rtol=3e-5)
    assert jnp.allclose(y2.imag, y2_ref.imag, atol=1e-5, rtol=3e-5)

    print("KERNEL_OK")
</pallas_src>

<mosaic_0001>
module attributes {stable_mosaic.version = 11 : i64} {
  func.func @kernel(%arg0: i32, %arg1: i32, %arg2: i32, %arg3: memref<1x2x2x128xf32, #tpu.memory_space<vmem>>, %arg4: memref<2x128xf32, #tpu.memory_space<vmem>>, %arg5: memref<2x128xf32, #tpu.memory_space<vmem>>, %arg6: memref<1x2x2x128xf32, #tpu.memory_space<vmem>>, %arg7: memref<2x128xf32, #tpu.memory_space<vmem>>) attributes {dimension_semantics = [#tpu.dimension_semantics<parallel>, #tpu.dimension_semantics<arbitrary>, #tpu.dimension_semantics<arbitrary>], iteration_bounds = array<i64: 2, 2, 1>, scalar_prefetch = 0 : i64, scratch_operands = 1 : i64, tpu.core_type = #tpu.core_type<tc>, window_params = [{transform_indices = @transform_0, window_bounds = array<i64: 1, 2, 2, 128>}, {pipeline_mode = #tpu.pipeline_mode<synchronous>, transform_indices = @transform_1, window_bounds = array<i64: 2, 128>}, {pipeline_mode = #tpu.pipeline_mode<synchronous>, transform_indices = @transform_2, window_bounds = array<i64: 2, 128>}, {transform_indices = @transform_3, window_bounds = array<i64: 1, 2, 2, 128>}]} {
    %c0_i32 = arith.constant 0 : i32
    %0 = arith.cmpi eq, %arg1, %c0_i32 : i32
    %c0_i32_0 = arith.constant 0 : i32
    %1 = arith.cmpi eq, %arg2, %c0_i32_0 : i32
    %2 = arith.andi %0, %1 : i1
    %3 = arith.extui %2 : i1 to i32
    %c0_i32_1 = arith.constant 0 : i32
    %4 = arith.cmpi ne, %3, %c0_i32_1 : i32
    scf.if %4 {
      %cst = arith.constant 0.000000e+00 : f32
      %11 = vector.broadcast %cst : f32 to vector<2x128xf32>
      %c0 = arith.constant 0 : index
      %c0_5 = arith.constant 0 : index
      %12 = vector.load %arg7[%c0, %c0_5] : memref<2x128xf32, #tpu.memory_space<vmem>>, vector<2x128xf32>
      tpu.vector_store %arg7[%c0, %c0_5], %11 {strides = array<i32>} : memref<2x128xf32, #tpu.memory_space<vmem>>, vector<2x128xf32>,
    } else {
    }
    %c0_i32_2 = arith.constant 0 : i32
    %5 = arith.cmpi eq, %arg1, %c0_i32_2 : i32
    %6 = arith.extui %5 : i1 to i32
    %c0_i32_3 = arith.constant 0 : i32
    %7 = arith.cmpi ne, %6, %c0_i32_3 : i32
    scf.if %7 {
      %c0 = arith.constant 0 : index
      %c0_5 = arith.constant 0 : index
      %11 = vector.load %arg7[%c0, %c0_5] : memref<2x128xf32, #tpu.memory_space<vmem>>, vector<1x128xf32>
      %c0_6 = arith.constant 0 : index
      %c0_7 = arith.constant 0 : index
      %c0_8 = arith.constant 0 : index
      %c0_9 = arith.constant 0 : index
      %12 = vector.load %arg3[%c0_6, %c0_7, %c0_8, %c0_9] : memref<1x2x2x128xf32, #tpu.memory_space<vmem>>, vector<1x1x2x128xf32>
      %13 = vector.shape_cast %12 : vector<1x1x2x128xf32> to vector<2x128xf32>
      %cst = arith.constant dense<0.000000e+00> : vector<128xf32>
      %14 = vector.multi_reduction <add>, %13, %cst [0] : vector<2x128xf32> to vector<128xf32>
      %15 = vector.shape_cast %14 : vector<128xf32> to vector<1x128xf32>
      %16 = arith.addf %11, %15 : vector<1x128xf32>
      %c0_10 = arith.constant 0 : index
      %c0_11 = arith.constant 0 : index
      %17 = vector.load %arg7[%c0_10, %c0_11] : memref<2x128xf32, #tpu.memory_space<vmem>>, vector<1x128xf32>
      tpu.vector_store %arg7[%c0_10, %c0_11], %16 {strides = array<i32>} : memref<2x128xf32, #tpu.memory_space<vmem>>, vector<1x128xf32>,
      %c1 = arith.constant 1 : index
      %c0_12 = arith.constant 0 : index
      %18 = vector.load %arg7[%c1, %c0_12] : memref<2x128xf32, #tpu.memory_space<vmem>>, vector<1x128xf32>
      %c0_13 = arith.constant 0 : index
      %c1_14 = arith.constant 1 : index
      %c0_15 = arith.constant 0 : index
      %c0_16 = arith.constant 0 : index
      %19 = vector.load %arg3[%c0_13, %c1_14, %c0_15, %c0_16] : memref<1x2x2x128xf32, #tpu.memory_space<vmem>>, vector<1x1x2x128xf32>
      %20 = vector.shape_cast %19 : vector<1x1x2x128xf32> to vector<2x128xf32>
      %cst_17 = arith.constant dense<0.000000e+00> : vector<128xf32>
      %21 = vector.multi_reduction <add>, %20, %cst_17 [0] : vector<2x128xf32> to vector<128xf32>
      %22 = vector.shape_cast %21 : vector<128xf32> to vector<1x128xf32>
      %23 = arith.addf %18, %22 : vector<1x128xf32>
      %c1_18 = arith.constant 1 : index
      %c0_19 = arith.constant 0 : index
      %24 = vector.load %arg7[%c1_18, %c0_19] : memref<2x128xf32, #tpu.memory_space<vmem>>, vector<1x128xf32>
      tpu.vector_store %arg7[%c1_18, %c0_19], %23 {strides = array<i32>} : memref<2x128xf32, #tpu.memory_space<vmem>>, vector<1x128xf32>,
    } else {
    }
    %c1_i32 = arith.constant 1 : i32
    %8 = arith.cmpi eq, %arg1, %c1_i32 : i32
    %9 = arith.extui %8 : i1 to i32
    %c0_i32_4 = arith.constant 0 : i32
    %10 = arith.cmpi ne, %9, %c0_i32_4 : i32
    scf.if %10 {
      %c0 = arith.constant 0 : index
      %c0_5 = arith.constant 0 : index
      %11 = vector.load %arg7[%c0, %c0_5] : memref<2x128xf32, #tpu.memory_space<vmem>>, vector<2x128xf32>
      %12 = vector.extract_strided_slice %11 {offsets = [0, 0], sizes = [1, 128], strides = [1, 1]} : vector<2x128xf32> to vector<1x128xf32>
      %13 = vector.shape_cast %12 : vector<1x128xf32> to vector<1x1x128xf32>
      %cst = arith.constant dense<0.000000e+00> : vector<1xf32>
      %14 = vector.multi_reduction <add>, %13, %cst [1, 2] : vector<1x1x128xf32> to vector<1xf32>
      %15 = vector.shape_cast %14 : vector<1xf32> to vector<1x1x1xf32>
      %16 = vector.extract %15[0, 0, 0] : f32 from vector<1x1x1xf32>
      %cst_6 = arith.constant 3.906250e-03 : f32
      %17 = arith.mulf %16, %cst_6 : f32
      %18 = vector.extract_strided_slice %11 {offsets = [1, 0], sizes = [1, 128], strides = [1, 1]} : vector<2x128xf32> to vector<1x128xf32>
      %19 = vector.shape_cast %18 : vector<1x128xf32> to vector<1x1x128xf32>
      %cst_7 = arith.constant dense<0.000000e+00> : vector<1xf32>
      %20 = vector.multi_reduction <add>, %19, %cst_7 [1, 2] : vector<1x1x128xf32> to vector<1xf32>
      %21 = vector.shape_cast %20 : vector<1xf32> to vector<1x1x1xf32>
      %22 = vector.extract %21[0, 0, 0] : f32 from vector<1x1x1xf32>
      %cst_8 = arith.constant 3.906250e-03 : f32
      %23 = arith.mulf %22, %cst_8 : f32
      %c0_9 = arith.constant 0 : index
      %c0_10 = arith.constant 0 : index
      %c0_11 = arith.constant 0 : index
      %c0_12 = arith.constant 0 : index
      %24 = vector.load %arg3[%c0_9, %c0_10, %c0_11, %c0_12] : memref<1x2x2x128xf32, #tpu.memory_space<vmem>>, vector<1x1x2x128xf32>
      %25 = vector.shape_cast %24 : vector<1x1x2x128xf32> to vector<2x128xf32>
      %c0_13 = arith.constant 0 : index
      %c1 = arith.constant 1 : index
      %c0_14 = arith.constant 0 : index
      %c0_15 = arith.constant 0 : index
      %26 = vector.load %arg3[%c0_13, %c1, %c0_14, %c0_15] : memref<1x2x2x128xf32, #tpu.memory_space<vmem>>, vector<1x1x2x128xf32>
      %27 = vector.shape_cast %26 : vector<1x1x2x128xf32> to vector<2x128xf32>
      %28 = vector.broadcast %17 : f32 to vector<2x128xf32>
      %29 = arith.subf %25, %28 : vector<2x128xf32>
      %30 = vector.broadcast %23 : f32 to vector<2x128xf32>
      %31 = arith.subf %27, %30 : vector<2x128xf32>
      %32 = arith.mulf %29, %29 : vector<2x128xf32>
      %33 = arith.mulf %31, %31 : vector<2x128xf32>
      %34 = arith.addf %32, %33 : vector<2x128xf32>
      %cst_16 = arith.constant 1.000000e-10 : f32
      %35 = vector.broadcast %cst_16 : f32 to vector<2x128xf32>
      %36 = arith.addf %34, %35 : vector<2x128xf32>
      %37 = math.rsqrt %36 : vector<2x128xf32>
      %c0_17 = arith.constant 0 : index
      %c0_18 = arith.constant 0 : index
      %38 = vector.load %arg4[%c0_17, %c0_18] : memref<2x128xf32, #tpu.memory_space<vmem>>, vector<2x128xf32>
      %39 = arith.mulf %29, %37 : vector<2x128xf32>
      %40 = arith.mulf %38, %39 : vector<2x128xf32>
      %c0_19 = arith.constant 0 : index
      %c0_20 = arith.constant 0 : index
      %41 = vector.load %arg5[%c0_19, %c0_20] : memref<2x128xf32, #tpu.memory_space<vmem>>, vector<2x128xf32>
      %42 = arith.addf %40, %41 : vector<2x128xf32>
      %c0_21 = arith.constant 0 : index
      %c0_22 = arith.constant 0 : index
      %c0_23 = arith.constant 0 : index
      %c0_24 = arith.constant 0 : index
      %43 = vector.load %arg6[%c0_21, %c0_22, %c0_23, %c0_24] : memref<1x2x2x128xf32, #tpu.memory_space<vmem>>, vector<1x1x2x128xf32>
      %44 = vector.shape_cast %43 : vector<1x1x2x128xf32> to vector<2x128xf32>
      %45 = vector.shape_cast %42 : vector<2x128xf32> to vector<1x1x2x128xf32>
      tpu.vector_store %arg6[%c0_21, %c0_22, %c0_23, %c0_24], %45 {strides = array<i32>} : memref<1x2x2x128xf32, #tpu.memory_space<vmem>>, vector<1x1x2x128xf32>,
      %46 = arith.mulf %31, %37 : vector<2x128xf32>
      %47 = arith.mulf %38, %46 : vector<2x128xf32>
      %c0_25 = arith.constant 0 : index
      %c1_26 = arith.constant 1 : index
      %c0_27 = arith.constant 0 : index
      %c0_28 = arith.constant 0 : index
      %48 = vector.load %arg6[%c0_25, %c1_26, %c0_27, %c0_28] : memref<1x2x2x128xf32, #tpu.memory_space<vmem>>, vector<1x1x2x128xf32>
      %49 = vector.shape_cast %48 : vector<1x1x2x128xf32> to vector<2x128xf32>
      %50 = vector.shape_cast %47 : vector<2x128xf32> to vector<1x1x2x128xf32>
      tpu.vector_store %arg6[%c0_25, %c1_26, %c0_27, %c0_28], %50 {strides = array<i32>} : memref<1x2x2x128xf32, #tpu.memory_space<vmem>>, vector<1x1x2x128xf32>,
    } else {
    }
    return
  }
  func.func @transform_0(%arg0: i32, %arg1: i32, %arg2: i32) -> (i32, i32, i32, i32) {
    %c0_i32 = arith.constant 0 : i32
    %c0_i32_0 = arith.constant 0 : i32
    %c0_i32_1 = arith.constant 0 : i32
    return %arg0, %c0_i32, %arg2, %c0_i32_0 : i32, i32, i32, i32
  }
  func.func @transform_1(%arg0: i32, %arg1: i32, %arg2: i32) -> (i32, i32) {
    %c0_i32 = arith.constant 0 : i32
    %c0_i32_0 = arith.constant 0 : i32
    %c0_i32_1 = arith.constant 0 : i32
    return %c0_i32, %c0_i32_0 : i32, i32
  }
  func.func @transform_2(%arg0: i32, %arg1: i32, %arg2: i32) -> (i32, i32) {
    %c0_i32 = arith.constant 0 : i32
    %c0_i32_0 = arith.constant 0 : i32
    %c0_i32_1 = arith.constant 0 : i32
    return %c0_i32, %c0_i32_0 : i32, i32
  }
  func.func @transform_3(%arg0: i32, %arg1: i32, %arg2: i32) -> (i32, i32, i32, i32) {
    %0 = arith.muli %arg1, %arg2 : i32
    %c0_i32 = arith.constant 0 : i32
    %c0_i32_0 = arith.constant 0 : i32
    %c0_i32_1 = arith.constant 0 : i32
    return %arg0, %c0_i32, %0, %c0_i32_0 : i32, i32, i32, i32
  }
}

</mosaic_0001>

<bundles_post_ra>
// kernel: custom-call
= control target key start
LH: loop header
LB: loop body
LE: loop exit
PB: predicated region body
PF: predicated region fallthrough
CT: control target
= control target key end

     0   :  { %2 = vsyncpa [#allocation0], 0  ;;  %s47_s0 = inlined_call_operand.hbm [shape: c64[2,8,32], index: 0, kind: input, shape index: {}]   ;;  %s48_s1 = inlined_call_operand.vmem [shape: f32[2,8,32], index: 1, kind: output, shape index: {}]  }
   0x1   :  { %s3_s8 = sshll.u32 %s48_s1, 4  ;;  %s4_s8 = int_to_ptr.vmem [resolvable:$true] %s3_s8 }
   0x2   :  { %s17_s9 = scalar_lea.vmem %s4_s8, 256  ;;  %p22_p1 = scmp.lt.s32.totalorder %s4_s8, %s4_s8 }
   0x3   :  { %p18_p0 = scmp.ne.s32.totalorder %s4_s8, %s17_s9  ;;  %p23_p2 = scmp.lt.s32.totalorder %s17_s9, %s17_s9 }
   0x5   :  { %p24_p3 = por %p23_p2, %p22_p1 }
   0x7   :  { %p25_p4 = pnand %p24_p3, %p18_p0 }
   0x9   :  { %28 = shalt.err (!%p25_p4)  }
   0xa   :  { %6 = dma.hbm_to_vmem [thread:$0]  %s47_s0, 256, %s4_s8, [#allocation0] }
   0xb   :  { %29 = dma.done.wait [#allocation0], 256  }
   0xc   :  { %30 = vsyncadd [#allocation0], 4294967040 }
   0xd   :  { %8 = vsyncpa [#allocation0], 1 }

// kernel: custom-call.1
= control target key start
LH: loop header
LB: loop body
LE: loop exit
PB: predicated region body
PF: predicated region fallthrough
CT: control target
= control target key end

     0   :  { %s51_s0 = inlined_call_operand.hbm [shape: c64[2,8,32], index: 0, kind: input, shape index: {}]   ;;  %s52_s1 = inlined_call_operand.vmem [shape: f32[2,8,32], index: 1, kind: output, shape index: {}]  }
   0x1   :  { %s2_s8 = scalar_lea.hbm %s51_s0, 256 }
   0x2   :  { %3 = vsyncpa [#allocation0], 0  ;;  %s4_s11 = sshll.u32 %s52_s1, 4  ;;  %s5_s11 = int_to_ptr.vmem [resolvable:$true] %s4_s11 }
   0x3   :  { %s20_s12 = scalar_lea.vmem %s5_s11, 256  ;;  %p25_p1 = scmp.lt.s32.totalorder %s5_s11, %s5_s11 }
   0x4   :  { %p21_p0 = scmp.ne.s32.totalorder %s5_s11, %s20_s12  ;;  %p26_p2 = scmp.lt.s32.totalorder %s20_s12, %s20_s12 }
   0x6   :  { %p27_p3 = por %p26_p2, %p25_p1 }
   0x8   :  { %p28_p4 = pnand %p27_p3, %p21_p0 }
   0xa   :  { %31 = shalt.err (!%p28_p4)  }
   0xb   :  { %7 = dma.hbm_to_vmem [thread:$0]  %s2_s8, 256, %s5_s11, [#allocation0] }
   0xc   :  { %33 = dma.done.wait [#allocation0], 256  }
   0xd   :  { %34 = vsyncadd [#allocation0], 4294967040 }
   0xe   :  { %9 = vsyncpa [#allocation0], 1 }

// kernel: custom-call.2
= control target key start
LH: loop header
LB: loop body
LE: loop exit
PB: predicated region body
PF: predicated region fallthrough
CT: control target
= control target key end

     0   :  { %s92_s0 = inlined_call_operand.vmem [shape: f32[2,8,32], index: 0, kind: input, shape index: {}]   ;;  %s93_s1 = inlined_call_operand.vmem [shape: f32[2,8,32], index: 1, kind: input, shape index: {}]   ;;  %s94_s2 = inlined_call_operand.hbm [shape: c64[2,8,32], index: 2, kind: output, shape index: {}]  }
   0x1   :  { %s3_s11 = scalar_lea.hbm %s94_s2, 256 }
   0x2   :  { %4 = vsyncpa [#allocation0], 0  ;;  %s5_s14 = sshll.u32 %s92_s0, 4  ;;  %s6_s14 = int_to_ptr.vmem [resolvable:$true] %s5_s14 }
   0x3   :  { %s18_s15 = scalar_lea.vmem %s6_s14, 256  ;;  %p23_p1 = scmp.lt.s32.totalorder %s6_s14, %s6_s14 }
   0x4   :  { %p19_p0 = scmp.ne.s32.totalorder %s6_s14, %s18_s15  ;;  %p24_p2 = scmp.lt.s32.totalorder %s18_s15, %s18_s15 }
   0x6   :  { %p25_p3 = por %p24_p2, %p23_p1 }
   0x8   :  { %p26_p4 = pnand %p25_p3, %p19_p0 }
   0xa   :  { %29 = shalt.err (!%p26_p4)  }
   0xb   :  { %8 = dma.vmem_to_hbm [thread:$0]  %s6_s14, 256, %s94_s2, [#allocation0] }
   0xc   :  { %61 = dma.done.wait [#allocation0], 256  }
   0xd   :  { %62 = vsyncadd [#allocation0], 4294967040 }
   0xe   :  { %10 = vsyncpa [#allocation0], 1 }
   0xf   :  { %11 = vsyncpa [#allocation1], 0  ;;  %s12_s0 = sshll.u32 %s93_s1, 4  ;;  %s13_s0 = int_to_ptr.vmem [resolvable:$true] %s12_s0 }
  0x10   :  { %s38_s20 = scalar_lea.vmem %s13_s0, 256  ;;  %p43_p6 = scmp.lt.s32.totalorder %s13_s0, %s13_s0 }
  0x11   :  { %p39_p5 = scmp.ne.s32.totalorder %s13_s0, %s38_s20  ;;  %p44_p7 = scmp.lt.s32.totalorder %s38_s20, %s38_s20 }
  0x13   :  { %p45_p8 = por %p44_p7, %p43_p6 }
  0x15   :  { %p46_p9 = pnand %p45_p8, %p39_p5 }
  0x17   :  { %49 = shalt.err (!%p46_p9)  }
  0x18   :  { %15 = dma.vmem_to_hbm [thread:$0]  %s13_s0, 256, %s3_s11, [#allocation1] }
  0x19   :  { %63 = dma.done.wait [#allocation1], 256  }
  0x1a   :  { %64 = vsyncadd [#allocation1], 4294967040 }
  0x1b   :  { %17 = vsyncpa [#allocation1], 1 }

// kernel: complex_layer_norm.1
= control target key start
LH: loop header
LB: loop body
LE: loop exit
PB: predicated region body
PF: predicated region fallthrough
CT: control target
= control target key end

     0   :  { %s522_s12 = smov 0   ;;  %s524_s13 = smov 0   ;;  %s594_s0 = inlined_call_operand.vmem [shape: f32[2,2,2,128], index: 0, kind: input, shape index: {}, may-alias: {0,3}]   ;;  %s595_s1 = inlined_call_operand.vmem [shape: f32[2,128], index: 1, kind: input, shape index: {}]   ;;  %s596_s2 = inlined_call_operand.vmem [shape: f32[2,128], index: 2, kind: input, shape index: {}]   ;;  %s597_s3 = inlined_call_operand.vmem [shape: f32[2,2,2,128], index: 3, kind: output, shape index: {}, may-alias: {0,3}]  }
   0x1   :  { %s526_s14 = smov 0   ;;  %s528_s15 = smov 0  }
   0x2   :  { %s530_s16 = smov 0  }
   0x3 LB: > { %s28_s17 = sadd.s32 1, %s491_s14  ;;  %s32_s18 = sadd.s32 1, %s495_s15  ;;  %s499_s16 = sphi %s530_s16, %s13_s16   ;;  %s495_s15 = sphi %s528_s15, %s601_s15   ;;  %s491_s14 = sphi %s526_s14, %s600_s14   ;;  %s487_s13 = sphi %s524_s13, %s599_s13   ;;  %s483_s12 = sphi %s522_s12, %s598_s12  }
   0x4   : > { %p30_p0 = scmp.ge.s32.totalorder %s28_s17, 2  ;;  %p398_p1 = scmp.ge.s32.totalorder %s499_s16, 1 }
   0x5   : > { %p165_p2 = scmp.lt.s32.totalorder %s499_s16, 5 }
   0x6   : > { %s603_s17 = smov (%p30_p0, %s28_s17), 0  ;;  %s605_s18 = smov (!%p30_p0, %s32_s18), %s495_s15 }
   0x7   : > { %p166_p3 = pnand %p398_p1, %p165_p2  ;;  %p34_p4 = scmp.ge.s32.totalorder %s605_s18, 2 }
   0x8   : > { %p196_p5 = scmp.lt.s32.totalorder (!%p166_p3), %s487_s13, 1  ;;  %p214_p6 = scmp.eq.s32.totalorder (!%p166_p3), %s483_s12, 0 }
   0x9   : > { %s607_s18 = smov (%p34_p4, %s605_s18), 0  ;;  %169 = sbr.rel (%p166_p3) target bundleno = 288 (0x120), region = 32 }
   0xe   : > { %s609_s13 = smov (!%p196_p5, %s487_s13), 1  ;;  %219 = sbr.rel (!%p214_p6) target bundleno = 19 (0x13), region = 36  ;;  %v501_v0 = vmov (%p214_p6), 0.0  }
   0xf   : > { %s411_s19 = sshll.u32 %s609_s13, 2  ;;  %220 = vst [vmem:[#allocation2] sm:$0x3] (%p214_p6), %v501_v0 }
  0x10   : > { %s558_s22 = scalar_lea.vmem %s594_s0, %s411_s19  ;;  %s563_s25 = scalar_lea.vmem %s597_s3, %s411_s19 }
  0x13 PF: > { %p404_p7 = scmp.ne.s32.totalorder %s483_s12, 0 }
  0x15   : > { %223 = sbr.rel (%p404_p7) target bundleno = 43 (0x2b), region = 40 }
  0x1a   : > { %v225_v1 = vld [vmem:[%s558_s22] sm:$0x3]  ;;  %vm226_vm0 = vcmask 1041408   ;;  %v405_v3 = vld [vmem:[%s558_s22 + $0x2] sm:$0x3] }
  0x1b   : > { %v227_v2 = vsel %vm226_vm0, %v225_v1, 0.0  ;;  %v239_v5 = vsel %vm226_vm0, %v405_v3, 0.0  ;;  %v224_v14 = vld [vmem:[#allocation2] sm:$0x1]  ;;  %v236_v17 = vld [vmem:[#allocation2 + $0x1] sm:$0x1] }
  0x1c   : > { %v228_v4 = vrot.slane %v227_v2, 4  ;;  %v240_v6 = vrot.slane %v239_v5, 4 }
  0x1e   : > { %v229_v7 = vadd.f32 %v228_v4, %v227_v2  ;;  %v241_v8 = vadd.f32 %v240_v6, %v239_v5 }
  0x20   : > { %v230_v9 = vrot.slane %v229_v7, 2  ;;  %v242_v10 = vrot.slane %v241_v8, 2 }
  0x22   : > { %v231_v11 = vadd.f32 %v230_v9, %v229_v7  ;;  %v243_v12 = vadd.f32 %v242_v10, %v241_v8 }
  0x24   : > { %v232_v13 = vrot.slane %v231_v11, 1  ;;  %v244_v15 = vrot.slane %v243_v12, 1 }
  0x26   : > { %v233_v16 = vadd.f32 %v232_v13, %v231_v11  ;;  %v245_v18 = vadd.f32 %v244_v15, %v243_v12 }
  0x28   : > { %v234_v19 = vadd.f32 %v233_v16, %v224_v14  ;;  %v246_v20 = vadd.f32 %v245_v18, %v236_v17 }
  0x2a   : > { %235 = vst [vmem:[#allocation2] sm:$0x1] %v234_v19  ;;  %247 = vst [vmem:[#allocation2 + $0x1] sm:$0x1] %v246_v20 }
  0x2b PF: > { %p406_p8 = scmp.ne.s32.totalorder %s483_s12, 1 }
  0x2d   : > { %251 = sbr.rel (%p406_p8) target bundleno = 288 (0x120), region = 44 }
  0x32   : > { %v252_v21 = vld [vmem:[#allocation2] sm:$0x3]  ;;  %vm253_vm1 = vcmask 1040384   ;;  %v407_v41 = vld [vmem:[%s558_s22 + $0x2] sm:$0x3] }
  0x33   : > { %v254_v22 = vsel %vm253_vm1, %v252_v21, 0.0  ;;  %v266_v23 = vrot.slane %v252_v21, 1  ;;  %v279_v39 = vld [vmem:[%s558_s22] sm:$0x3] }
  0x34   : > { %255 = vadd.xlane.f32.xlu0 %v254_v22  ;;  %v291_v50 = vld [vmem:[%s595_s1] sm:$0x3] }
  0x35   : > { %v268_v24 = vsel %vm253_vm1, %v266_v23, 0.0  ;;  %v294_v53 = vld [vmem:[%s596_s2] sm:$0x3] }
  0x38   : > { %269 = vadd.xlane.f32.xlu0 %v268_v24 }
  0xbd   : > { %v256_v25 = vpop.xlane.xlu0 %255 }
  0xbe   : > { %v257_v26 = vrot.slane %v256_v25, 4 }
  0xc0   : > { %v258_v27 = vadd.f32 %v257_v26, %v256_v25 }
  0xc1   : > { %v270_v28 = vpop.xlane.xlu0 %269 }
  0xc2   : > { %v259_v29 = vrot.slane %v258_v27, 2  ;;  %v271_v30 = vrot.slane %v270_v28, 4 }
  0xc4   : > { %v272_v31 = vadd.f32 %v271_v30, %v270_v28  ;;  %v260_v32 = vadd.f32 %v259_v29, %v258_v27 }
  0xc6   : > { %v273_v33 = vrot.slane %v272_v31, 2  ;;  %v261_v34 = vrot.slane %v260_v32, 1 }
  0xc8   : > { %v274_v35 = vadd.f32 %v273_v33, %v272_v31  ;;  %v262_v36 = vadd.f32 %v261_v34, %v260_v32 }
  0xca   : > { %414 = vpush %v262_v36  ;;  %v275_v37 = vrot.slane %v274_v35, 1 }
  0xcc   : > { %v276_v38 = vadd.f32 %v275_v37, %v274_v35 }
  0xce   : > { %416 = vpush %v276_v38 }
  0xfb   : > { %s415_s26 = spop %414 }
  0xfc   : > { %s264_s27 = smul.f32 0.00390625, %s415_s26 }
  0xfe   : > { %v282_v40 = vstv %s264_s27 }
  0xff   : > { %s417_s28 = spop %416  ;;  %v283_v42 = vsub.f32 %v279_v39, %v282_v40 }
 0x100   : > { %s278_s29 = smul.f32 0.00390625, %s417_s28 }
 0x101   : > { %v286_v45 = vmul.f32 %v283_v42, %v283_v42 }
 0x102   : > { %v284_v43 = vstv %s278_s29 }
 0x103   : > { %v285_v44 = vsub.f32 %v407_v41, %v284_v43 }
 0x105   : > { %v287_v46 = vmul.f32 %v285_v44, %v285_v44 }
 0x107   : > { %v288_v47 = vadd.f32 %v287_v46, %v286_v45 }
 0x109   : > { %v289_v48 = vadd.f32 1e-10, %v288_v47 }
 0x10b   : > { %459 = vrsqrt.f32 %v289_v48 }
 0x118   : > { %v460_v49 = vpop.eup %459 }
 0x119   : > { %v292_v51 = vmul.f32 %v460_v49, %v283_v42  ;;  %v297_v52 = vmul.f32 %v460_v49, %v285_v44 }
 0x11b   : > { %v293_v54 = vmul.f32 %v292_v51, %v291_v50  ;;  %v298_v55 = vmul.f32 %v297_v52, %v291_v50 }
 0x11d   : > { %v295_v56 = vadd.f32 %v294_v53, %v293_v54  ;;  %408 = vst [vmem:[%s563_s25 + $0x2] sm:$0x3] %v298_v55 }
 0x11f   : > { %296 = vst [vmem:[%s563_s25] sm:$0x3] %v295_v56 }
 0x120 PF: > { %s13_s16 = sadd.s32 1, %s499_s16   ;;  %s598_s12 = smov %s491_s14 }
 0x121   : > { %p10_p9 = scmp.ge.s32.totalorder %s13_s16, 6   ;;  %s599_s13 = smov %s495_s15 }
 0x122   : > { %s600_s14 = smov %s603_s17  ;;  %s601_s15 = smov %s607_s18 }
 0x123   :  { %12 = sbr.rel (!%p10_p9) target bundleno = 3 (0x3), region = 77 }

</bundles_post_ra>
